<compile_context>
chip_gen: v6e
topology: v6e:2x2x1
jax: 0.10.0
libtpu: 0.0.40
codegen_flags: <defaults>
</compile_context>

<pallas_src>
import functools

import jax
import jax.numpy as jnp
from jax import lax
from jax.experimental import pallas as pl
from jax.experimental.pallas import tpu as pltpu


# Leave headroom under v7x's 64 MiB physical VMEM (v5e/v6e have 128 MiB).
_VMEM_LIMIT = 48 * 1024 * 1024

# Preferred tile sizes; fall back to the full dimension when it is not an exact
# multiple so small/toy shapes stay (8,128)-legal (full-dim blocks are always ok).
_TM, _TN, _TK = 256, 512, 512      # matmul tiles (re-derived small enough for v7x VMEM)
_TQ, _TKV = 128, 128               # flash-attention q / kv tiles


def _fit(dim, pref):
    return pref if dim % pref == 0 else dim


# --------------------------- tiled linear (+bias, +GELU) ---------------------------

def _linear_kernel(x_ref, w_ref, b_ref, o_ref, acc_ref, *, activation):
    k = pl.program_id(2)

    @pl.when(k == 0)
    def _():
        acc_ref[...] = jnp.zeros_like(acc_ref)

    acc_ref[...] += jnp.dot(
        x_ref[...].astype(jnp.bfloat16), w_ref[...],
        preferred_element_type=jnp.float32)

    @pl.when(k == pl.num_programs(2) - 1)
    def _():
        y = acc_ref[...] + b_ref[...]
        if activation == "gelu":
            # TODO(synk): HF BERT uses exact erf-GELU; tanh approximation used for
            # guaranteed Mosaic lowering (~1e-3 close). Epilogue kept in f32 (v5e).
            c = jnp.float32(0.7978845608028654)  # sqrt(2/pi)
            y = 0.5 * y * (1.0 + jnp.tanh(c * (y + 0.044715 * y * y * y)))
        o_ref[...] = y.astype(o_ref.dtype)


def linear(x, w, b, activation=None, out_dtype=jnp.float32):
    """x: [M, K] (f32/bf16), w: [K, N] (bf16), b: [N] (f32) -> [M, N] (out_dtype)."""
    M, K = x.shape
    N = w.shape[1]
    tm, tn, tk = _fit(M, _TM), _fit(N, _TN), _fit(K, _TK)
    grid = (M // tm, N // tn, K // tk)
    kernel = functools.partial(_linear_kernel, activation=activation)
    flops = 2 * M * N * K
    trans = M * N if activation == "gelu" else 0
    bytes_accessed = (M * K * x.dtype.itemsize + K * N * w.dtype.itemsize
                      + M * N * jnp.dtype(out_dtype).itemsize)
    return pl.pallas_call(
        kernel,
        out_shape=jax.ShapeDtypeStruct((M, N), out_dtype),
        grid_spec=pltpu.PrefetchScalarGridSpec(
            num_scalar_prefetch=0,
            grid=grid,
            in_specs=[
                pl.BlockSpec((tm, tk), lambda i, j, k: (i, k)),
                pl.BlockSpec((tk, tn), lambda i, j, k: (k, j)),
                pl.BlockSpec((1, tn), lambda i, j, k: (0, j)),
            ],
            out_specs=pl.BlockSpec((tm, tn), lambda i, j, k: (i, j)),
            scratch_shapes=[pltpu.VMEM((tm, tn), jnp.float32)],
        ),
        compiler_params=pltpu.CompilerParams(
            dimension_semantics=("parallel", "parallel", "arbitrary"),
            vmem_limit_bytes=_VMEM_LIMIT,
        ),
        cost_estimate=pl.CostEstimate(
            flops=flops, transcendentals=trans, bytes_accessed=bytes_accessed),
    )(x, w, b.reshape(1, N).astype(jnp.float32))


# --------------- tiled linear with fused bias + residual-add + LayerNorm ---------------

def _linear_add_ln_kernel(x_ref, w_ref, b_ref, r_ref, g_ref, bt_ref, o_ref, acc_ref):
    k = pl.program_id(1)

    @pl.when(k == 0)
    def _():
        acc_ref[...] = jnp.zeros_like(acc_ref)

    acc_ref[...] += jnp.dot(
        x_ref[...].astype(jnp.bfloat16), w_ref[...],
        preferred_element_type=jnp.float32)

    @pl.when(k == pl.num_programs(1) - 1)
    def _():
        y = acc_ref[...] + b_ref[...] + r_ref[...]         # bias + residual
        mu = jnp.mean(y, axis=-1, keepdims=True)
        yc = y - mu
        var = jnp.mean(yc * yc, axis=-1, keepdims=True)
        yn = yc * lax.rsqrt(var + 1e-12)                    # BERT LayerNorm eps
        o_ref[...] = (yn * g_ref[...] + bt_ref[...]).astype(o_ref.dtype)


def linear_add_layernorm(x, w, b, res, gamma, beta):
    """LayerNorm(x @ w + b + res). x: [M, K], w: [K, H] (bf16), res: [M, H] f32.

    N (=H) is kept as a single tile so the LN row reduction lives entirely in the
    matmul epilogue (H is a multiple of 128 for real BERT; full-dim here).
    """
    M, K = x.shape
    N = w.shape[1]
    tm, tk = _fit(M, _TM), _fit(K, _TK)
    grid = (M // tm, K // tk)
    bytes_accessed = (M * K * x.dtype.itemsize + K * N * w.dtype.itemsize
                      + 2 * M * N * 4)
    return pl.pallas_call(
        _linear_add_ln_kernel,
        out_shape=jax.ShapeDtypeStruct((M, N), jnp.float32),
        grid_spec=pltpu.PrefetchScalarGridSpec(
            num_scalar_prefetch=0,
            grid=grid,
            in_specs=[
                pl.BlockSpec((tm, tk), lambda i, k: (i, k)),
                pl.BlockSpec((tk, N), lambda i, k: (k, 0)),
                pl.BlockSpec((1, N), lambda i, k: (0, 0)),
                pl.BlockSpec((tm, N), lambda i, k: (i, 0)),
                pl.BlockSpec((1, N), lambda i, k: (0, 0)),
                pl.BlockSpec((1, N), lambda i, k: (0, 0)),
            ],
            out_specs=pl.BlockSpec((tm, N), lambda i, k: (i, 0)),
            scratch_shapes=[pltpu.VMEM((tm, N), jnp.float32)],
        ),
        compiler_params=pltpu.CompilerParams(
            dimension_semantics=("parallel", "arbitrary"),
            vmem_limit_bytes=_VMEM_LIMIT,
        ),
        cost_estimate=pl.CostEstimate(
            flops=2 * M * N * K, transcendentals=0, bytes_accessed=bytes_accessed),
    )(x, w, b.reshape(1, N).astype(jnp.float32), res,
      gamma.reshape(1, N), beta.reshape(1, N))


# ------------------------ standalone LayerNorm (no residual) ------------------------

def _layernorm_kernel(x_ref, g_ref, b_ref, o_ref):
    x = x_ref[...]
    mu = jnp.mean(x, axis=-1, keepdims=True)
    xc = x - mu
    var = jnp.mean(xc * xc, axis=-1, keepdims=True)
    o_ref[...] = (xc * lax.rsqrt(var + 1e-12) * g_ref[...] + b_ref[...]).astype(o_ref.dtype)


def layernorm(x, gamma, beta):
    """LayerNorm over last axis, no residual (embedding LN)."""
    M, H = x.shape
    tm = _fit(M, _TM)
    return pl.pallas_call(
        _layernorm_kernel,
        out_shape=jax.ShapeDtypeStruct((M, H), jnp.float32),
        grid=(M // tm,),
        in_specs=[
            pl.BlockSpec((tm, H), lambda i: (i, 0)),
            pl.BlockSpec((1, H), lambda i: (0, 0)),
            pl.BlockSpec((1, H), lambda i: (0, 0)),
        ],
        out_specs=pl.BlockSpec((tm, H), lambda i: (i, 0)),
        compiler_params=pltpu.CompilerParams(
            dimension_semantics=("parallel",),
            vmem_limit_bytes=_VMEM_LIMIT,
        ),
    )(x, gamma.reshape(1, H), beta.reshape(1, H))


# ------------------------------ flash-style attention ------------------------------

def _flash_attn_kernel(q_ref, k_ref, v_ref, bias_ref, o_ref,
                       m_sc, l_sc, acc_sc, *, scale):
    ki = pl.program_id(2)

    @pl.when(ki == 0)
    def _():
        m_sc[...] = jnp.full_like(m_sc, -jnp.inf)
        l_sc[...] = jnp.zeros_like(l_sc)
        acc_sc[...] = jnp.zeros_like(acc_sc)

    q = q_ref[0].astype(jnp.bfloat16)                       # [tq, Dh]
    k = k_ref[0].astype(jnp.bfloat16)                       # [tk, Dh]
    s = jnp.dot(q, k.T, preferred_element_type=jnp.float32) * scale
    s = s + bias_ref[0]                                     # additive key-padding bias

    m_prev = m_sc[...]
    m_new = jnp.maximum(m_prev, jnp.max(s, axis=-1, keepdims=True))
    alpha = jnp.exp(m_prev - m_new)
    p = jnp.exp(s - m_new)
    l_sc[...] = alpha * l_sc[...] + jnp.sum(p, axis=-1, keepdims=True)
    acc_sc[...] = alpha * acc_sc[...] + jnp.dot(
        p.astype(jnp.bfloat16), v_ref[0].astype(jnp.bfloat16),
        preferred_element_type=jnp.float32)
    m_sc[...] = m_new

    @pl.when(ki == pl.num_programs(2) - 1)
    def _():
        o_ref[0] = (acc_sc[...] * pl.reciprocal(l_sc[...], approx=True)
                    ).astype(o_ref.dtype)


def flash_attention(q, k, v, key_bias, scale, num_heads):
    """q/k/v: [B*nH, S, Dh]; key_bias: [B, 1, S] additive (0 / -10000)."""
    BH, S, Dh = q.shape
    tq, tk = _fit(S, _TQ), _fit(S, _TKV)
    grid = (BH, S // tq, S // tk)
    kernel = functools.partial(_flash_attn_kernel, scale=scale)
    return pl.pallas_call(
        kernel,
        out_shape=jax.ShapeDtypeStruct((BH, S, Dh), q.dtype),
        grid_spec=pltpu.PrefetchScalarGridSpec(
            num_scalar_prefetch=0,
            grid=grid,
            in_specs=[
                pl.BlockSpec((1, tq, Dh), lambda bh, qi, ki: (bh, qi, 0)),
                pl.BlockSpec((1, tk, Dh), lambda bh, qi, ki: (bh, ki, 0)),
                pl.BlockSpec((1, tk, Dh), lambda bh, qi, ki: (bh, ki, 0)),
                pl.BlockSpec((1, 1, tk),
                             lambda bh, qi, ki: (bh // num_heads, 0, ki)),
            ],
            out_specs=pl.BlockSpec((1, tq, Dh), lambda bh, qi, ki: (bh, qi, 0)),
            scratch_shapes=[
                pltpu.VMEM((tq, 1), jnp.float32),   # running max
                pltpu.VMEM((tq, 1), jnp.float32),   # running denom
                pltpu.VMEM((tq, Dh), jnp.float32),  # running numerator
            ],
        ),
        compiler_params=pltpu.CompilerParams(
            dimension_semantics=("parallel", "parallel", "arbitrary"),
            vmem_limit_bytes=_VMEM_LIMIT,
        ),
    )(q, k, v, key_bias)


# ------------------------- fused pooler + dropout + classifier -------------------------

def _pooler_classifier_kernel(cls_ref, pw_ref, pb_ref, cw_ref, cb_ref, o_ref):
    pooled = jnp.tanh(
        jnp.dot(cls_ref[...], pw_ref[...], preferred_element_type=jnp.float32)
        + pb_ref[...])
    # TODO(synk): nn.Dropout(0.3) on pooled_output is identity in eval mode.
    logits = jnp.dot(pooled, cw_ref[...], preferred_element_type=jnp.float32) + cb_ref[...]
    o_ref[...] = logits.astype(o_ref.dtype)


def pooler_classifier(cls, pool_w, pool_b, cls_w, cls_b):
    """Tiny head: [B,H] @ [H,H] -> tanh -> [H,num_labels]. One small fused call
    (negligible FLOPs; not worth tiling, per review)."""
    B, H = cls.shape
    L = cls_w.shape[1]
    return pl.pallas_call(
        _pooler_classifier_kernel,
        out_shape=jax.ShapeDtypeStruct((B, L), jnp.float32),
        grid=(1,),
        in_specs=[
            pl.BlockSpec((B, H), lambda i: (0, 0)),
            pl.BlockSpec((H, H), lambda i: (0, 0)),
            pl.BlockSpec((1, H), lambda i: (0, 0)),
            pl.BlockSpec((H, L), lambda i: (0, 0)),
            pl.BlockSpec((1, L), lambda i: (0, 0)),
        ],
        out_specs=pl.BlockSpec((B, L), lambda i: (0, 0)),
        compiler_params=pltpu.CompilerParams(vmem_limit_bytes=_VMEM_LIMIT),
    )(cls, pool_w, pool_b.reshape(1, H), cls_w, cls_b.reshape(1, L))


# ---------------------------------- Model glue ----------------------------------

def init_params(key, *, vocab=100, max_pos=32, H=32, nH=2, I=64, L=2, num_labels=3):
    keys = iter(jax.random.split(key, 64))

    def w(shape, dtype=jnp.float32):
        return (0.02 * jax.random.normal(next(keys), shape, dtype=jnp.float32)).astype(dtype)

    def zeros(n):
        return jnp.zeros((n,), jnp.float32)

    bf16 = jnp.bfloat16
    params = {
        "num_heads": nH,
        "word_emb": w((vocab, H)),
        "pos_emb": w((max_pos, H)),
        "type_emb": w((2, H)),
        "emb_ln_g": jnp.ones((H,), jnp.float32),
        "emb_ln_b": zeros(H),
        "pool_w": w((H, H)),
        "pool_b": zeros(H),
        "cls_w": w((H, num_labels)),
        "cls_b": zeros(num_labels),
        "layers": [],
    }
    for _ in range(L):
        params["layers"].append({
            # fused QKV projection weights (concatenated along the output dim)
            "qkv_w": w((H, 3 * H), bf16), "qkv_b": zeros(3 * H),
            "o_w": w((H, H), bf16), "o_b": zeros(H),
            "attn_ln_g": jnp.ones((H,), jnp.float32), "attn_ln_b": zeros(H),
            "ffn_w1": w((H, I), bf16), "ffn_b1": zeros(I),
            "ffn_w2": w((I, H), bf16), "ffn_b2": zeros(H),
            "ffn_ln_g": jnp.ones((H,), jnp.float32), "ffn_ln_b": zeros(H),
        })
    return params


def bert_classifier_forward(params, input_ids, attention_mask):
    B, S = input_ids.shape
    H = params["word_emb"].shape[1]
    nH = params["num_heads"]
    Dh = H // nH
    scale = 1.0 / float(Dh) ** 0.5

    # --- Embeddings (word + position + token_type[=0]) + LayerNorm (no residual) ---
    we = jnp.take(params["word_emb"], input_ids, axis=0)        # [B, S, H]
    pe = params["pos_emb"][:S][None, :, :]
    te = params["type_emb"][0][None, None, :]
    emb = (we + pe + te).reshape(B * S, H)
    h = layernorm(emb, params["emb_ln_g"], params["emb_ln_b"])   # [B*S, H] f32

    # --- tiny additive key-padding bias, built once: [B, 1, S] (never [BH,S,S]) ---
    key_bias = ((1.0 - attention_mask.astype(jnp.float32)) * -10000.0)[:, None, :]

    # TODO(synk): head split/merge transposes stay in plain JAX — slicing H into
    # Dh-sized lane blocks would violate the 128-lane BlockSpec constraint.
    def split_heads(x):   # [B*S, H] -> [B*nH, S, Dh]
        return x.reshape(B, S, nH, Dh).transpose(0, 2, 1, 3).reshape(B * nH, S, Dh)

    # --- Transformer encoder layers ---
    for layer in params["layers"]:
        # fused QKV projection (one HBM pass over h), bf16 activations out
        qkv = linear(h, layer["qkv_w"], layer["qkv_b"], out_dtype=jnp.bfloat16)
        q, k, v = qkv[:, :H], qkv[:, H:2 * H], qkv[:, 2 * H:]

        ctx = flash_attention(split_heads(q), split_heads(k), split_heads(v),
                              key_bias, scale, nH)               # [B*nH, S, Dh] bf16
        ctx = ctx.reshape(B, nH, S, Dh).transpose(0, 2, 1, 3).reshape(B * S, H)

        # output projection with fused bias + residual + LayerNorm epilogue
        # TODO(synk): internal BERT dropouts are identity in eval mode.
        h = linear_add_layernorm(ctx, layer["o_w"], layer["o_b"], h,
                                 layer["attn_ln_g"], layer["attn_ln_b"])

        # FFN: w1 + GELU fused; w2 with fused bias + residual + LayerNorm
        inter = linear(h, layer["ffn_w1"], layer["ffn_b1"], activation="gelu",
                       out_dtype=jnp.bfloat16)
        h = linear_add_layernorm(inter, layer["ffn_w2"], layer["ffn_b2"], h,
                                 layer["ffn_ln_g"], layer["ffn_ln_b"])

    # --- Pooler (dense + tanh on [CLS]) + dropout(identity) + classifier, fused ---
    cls = h.reshape(B, S, H)[:, 0, :]                            # [B, H]
    logits = pooler_classifier(cls, params["pool_w"], params["pool_b"],
                               params["cls_w"], params["cls_b"])
    return logits


if __name__ == "__main__":
    key = jax.random.PRNGKey(0)
    pkey, ikey = jax.random.split(key)

    B, S, VOCAB, NUM_LABELS = 2, 8, 100, 3
    params = init_params(pkey, vocab=VOCAB, max_pos=32, H=32, nH=2, I=64, L=2,
                         num_labels=NUM_LABELS)

    input_ids = jax.random.randint(ikey, (B, S), 0, VOCAB, dtype=jnp.int32)
    attention_mask = jnp.array([[1, 1, 1, 1, 1, 1, 1, 1],
                                [1, 1, 1, 1, 1, 1, 0, 0]], dtype=jnp.int32)

    logits = bert_classifier_forward(params, input_ids, attention_mask)
    jax.block_until_ready(logits)
    assert logits.shape == (B, NUM_LABELS), logits.shape
    assert bool(jnp.all(jnp.isfinite(logits)))
    print("KERNEL_OK")
</pallas_src>

<mosaic_0001>
module attributes {stable_mosaic.version = 11 : i64} {
  func.func @_layernorm_kernel(%arg0: i32, %arg1: memref<16x32xf32, #tpu.memory_space<vmem>>, %arg2: memref<1x32xf32, #tpu.memory_space<vmem>>, %arg3: memref<1x32xf32, #tpu.memory_space<vmem>>, %arg4: memref<16x32xf32, #tpu.memory_space<vmem>>) attributes {dimension_semantics = [#tpu.dimension_semantics<parallel>], iteration_bounds = array<i64: 1>, scalar_prefetch = 0 : i64, scratch_operands = 0 : i64, tpu.core_type = #tpu.core_type<tc>, window_params = [{transform_indices = @transform_0, window_bounds = array<i64: 16, 32>}, {pipeline_mode = #tpu.pipeline_mode<synchronous>, transform_indices = @transform_1, window_bounds = array<i64: 1, 32>}, {pipeline_mode = #tpu.pipeline_mode<synchronous>, transform_indices = @transform_2, window_bounds = array<i64: 1, 32>}, {transform_indices = @transform_3, window_bounds = array<i64: 16, 32>}]} {
    %c0 = arith.constant 0 : index
    %c0_0 = arith.constant 0 : index
    %0 = vector.load %arg1[%c0, %c0_0] : memref<16x32xf32, #tpu.memory_space<vmem>>, vector<16x32xf32>
    %cst = arith.constant dense<0.000000e+00> : vector<16xf32>
    %1 = vector.multi_reduction <add>, %0, %cst [1] : vector<16x32xf32> to vector<16xf32>
    %2 = vector.shape_cast %1 : vector<16xf32> to vector<16x1xf32>
    %cst_1 = arith.constant 3.200000e+01 : f32
    %3 = vector.broadcast %cst_1 : f32 to vector<16x1xf32>
    %4 = arith.divf %2, %3 : vector<16x1xf32>
    %5 = vector.broadcast %4 : vector<16x1xf32> to vector<16x32xf32>
    %6 = arith.subf %0, %5 : vector<16x32xf32>
    %7 = arith.mulf %6, %6 : vector<16x32xf32>
    %cst_2 = arith.constant dense<0.000000e+00> : vector<16xf32>
    %8 = vector.multi_reduction <add>, %7, %cst_2 [1] : vector<16x32xf32> to vector<16xf32>
    %9 = vector.shape_cast %8 : vector<16xf32> to vector<16x1xf32>
    %cst_3 = arith.constant 3.200000e+01 : f32
    %10 = vector.broadcast %cst_3 : f32 to vector<16x1xf32>
    %11 = arith.divf %9, %10 : vector<16x1xf32>
    %cst_4 = arith.constant 9.99999996E-13 : f32
    %12 = vector.broadcast %cst_4 : f32 to vector<16x1xf32>
    %13 = arith.addf %11, %12 : vector<16x1xf32>
    %14 = math.rsqrt %13 : vector<16x1xf32>
    %15 = vector.broadcast %14 : vector<16x1xf32> to vector<16x32xf32>
    %16 = arith.mulf %6, %15 : vector<16x32xf32>
    %c0_5 = arith.constant 0 : index
    %c0_6 = arith.constant 0 : index
    %17 = vector.load %arg2[%c0_5, %c0_6] : memref<1x32xf32, #tpu.memory_space<vmem>>, vector<1x32xf32>
    %18 = vector.broadcast %17 : vector<1x32xf32> to vector<16x32xf32>
    %19 = arith.mulf %16, %18 : vector<16x32xf32>
    %c0_7 = arith.constant 0 : index
    %c0_8 = arith.constant 0 : index
    %20 = vector.load %arg3[%c0_7, %c0_8] : memref<1x32xf32, #tpu.memory_space<vmem>>, vector<1x32xf32>
    %21 = vector.broadcast %20 : vector<1x32xf32> to vector<16x32xf32>
    %22 = arith.addf %19, %21 : vector<16x32xf32>
    %c0_9 = arith.constant 0 : index
    %c0_10 = arith.constant 0 : index
    %23 = vector.load %arg4[%c0_9, %c0_10] : memref<16x32xf32, #tpu.memory_space<vmem>>, vector<16x32xf32>
    tpu.vector_store %arg4[%c0_9, %c0_10], %22 {strides = array<i32>} : memref<16x32xf32, #tpu.memory_space<vmem>>, vector<16x32xf32>,
    return
  }
  func.func @transform_0(%arg0: i32) -> (i32, i32) {
    %c0_i32 = arith.constant 0 : i32
    %c0_i32_0 = arith.constant 0 : i32
    return %arg0, %c0_i32 : i32, i32
  }
  func.func @transform_1(%arg0: i32) -> (i32, i32) {
    %c0_i32 = arith.constant 0 : i32
    %c0_i32_0 = arith.constant 0 : i32
    %c0_i32_1 = arith.constant 0 : i32
    return %c0_i32, %c0_i32_0 : i32, i32
  }
  func.func @transform_2(%arg0: i32) -> (i32, i32) {
    %c0_i32 = arith.constant 0 : i32
    %c0_i32_0 = arith.constant 0 : i32
    %c0_i32_1 = arith.constant 0 : i32
    return %c0_i32, %c0_i32_0 : i32, i32
  }
  func.func @transform_3(%arg0: i32) -> (i32, i32) {
    %c0_i32 = arith.constant 0 : i32
    %c0_i32_0 = arith.constant 0 : i32
    return %arg0, %c0_i32 : i32, i32
  }
}

</mosaic_0001>

<bundles_post_ra>
// kernel: tpu_custom_call.1
= control target key start
LH: loop header
LB: loop body
LE: loop exit
PB: predicated region body
PF: predicated region fallthrough
CT: control target
= control target key end

     0   :  { %8 = vsyncpa [#allocation3], 0  ;;  %s198_s0 = inlined_call_operand.hbm [shape: f32[16,32], index: 0, kind: input, shape index: {}]   ;;  %s199_s1 = inlined_call_operand.vmem [shape: f32[1,32], index: 1, kind: input, shape index: {}]   ;;  %s200_s2 = inlined_call_operand.vmem [shape: f32[1,32], index: 2, kind: input, shape index: {}]   ;;  %s201_s3 = inlined_call_operand.hbm [shape: f32[16,32], index: 3, kind: output, shape index: {}]  }
   0x1   :  { %9 = vsyncpa [#allocation4], 0  ;;  %s150_s12 = smov [#allocation2]  }
   0x2   :  { %s15_s13 = sshll.u32 %s150_s12, 4  ;;  %s16_s13 = int_to_ptr.vmem [resolvable:$true] %s15_s13 }
   0x3   :  { %s114_s14 = scalar_lea.vmem %s16_s13, 256  ;;  %p119_p1 = scmp.lt.s32.totalorder %s16_s13, %s16_s13 }
   0x4   :  { %p115_p0 = scmp.ne.s32.totalorder %s16_s13, %s114_s14  ;;  %p120_p2 = scmp.lt.s32.totalorder %s114_s14, %s114_s14 }
   0x6   :  { %p121_p3 = por %p120_p2, %p119_p1 }
   0x8   :  { %p122_p4 = pnand %p121_p3, %p115_p0 }
   0xa   :  { %125 = shalt.err (!%p122_p4)
}
   0xb   :  { %s151_s15 = smov 128   ;;  %s152_s16 = smov 8  }
   0xc   :  { %21 = dma.hbm_to_vmem [thread:$0]  %s198_s0, 256, %s16_s13, [#allocation3], %s151_s15, %s151_s15, %s152_s16  }
   0xd   :  { %146 = dma.done.wait [#allocation3], 256  }
   0xe   :  { %147 = vsyncadd [#allocation3], 4294967040  ;;  %vm31_vm0 = vcmask 261120   ;;  %v29_v0 = vld [vmem:[#allocation2] sm:$0xff]  ;;  %v30_v1 = vld [vmem:[#allocation2 + $0x8] sm:$0xff]  ;;  %s153_s22 = smov [#allocation5]  }
   0xf   :  { %v32_v2 = vsel %vm31_vm0, %v29_v0, 0.0  ;;  %v35_v3 = vsel %vm31_vm0, %v30_v1, 0.0  ;;  %v96_v21 = vld [vmem:[%s199_s1] ss:$0 sm:$0xff]  ;;  %s84_s23 = sshll.u32 %s153_s22, 4  ;;  %s85_s23 = int_to_ptr.vmem [resolvable:$true] %s84_s23 }
  0x10   :  { %33 = vadd.xlane.f32.xlu0 %v32_v2  ;;  %v97_v23 = vld [vmem:[%s200_s2] ss:$0 sm:$0xff]  ;;  %s126_s24 = scalar_lea.vmem %s85_s23, 256  ;;  %p131_p6 = scmp.lt.s32.totalorder %s85_s23, %s85_s23 }
  0x11   :  { %p127_p5 = scmp.ne.s32.totalorder %s85_s23, %s126_s24  ;;  %p132_p7 = scmp.lt.s32.totalorder %s126_s24, %s126_s24 }
  0x13   :  { %p133_p8 = por %p132_p7, %p131_p6 }
  0x14   :  { %36 = vadd.xlane.f32.xlu0 %v35_v3 }
  0x15   :  { %p134_p9 = pnand %p133_p8, %p127_p5 }
  0x99   :  { %v34_v4 = vpop.xlane.xlu0 %33 }
  0x9a   :  { %v39_v5 = vmul.f32 0.03125, %v34_v4 }
  0x9c   :  { %v41_v6 = vsub.f32 %v29_v0, %v39_v5 }
  0x9d   :  { %v37_v7 = vpop.xlane.xlu0 %36 }
  0x9e   :  { %v40_v8 = vmul.f32 0.03125, %v37_v7  ;;  %v43_v9 = vmul.f32 %v41_v6, %v41_v6 }
  0xa0   :  { %v42_v10 = vsub.f32 %v30_v1, %v40_v8  ;;  %v45_v11 = vsel %vm31_vm0, %v43_v9, 0.0 }
  0xa1   :  { %46 = vadd.xlane.f32.xlu1 %v45_v11 }
  0xa2   :  { %v44_v12 = vmul.f32 %v42_v10, %v42_v10 }
  0xa4   :  { %v48_v13 = vsel %vm31_vm0, %v44_v12, 0.0 }
  0xa5   :  { %49 = vadd.xlane.f32.xlu1 %v48_v13 }
 0x12a   :  { %v47_v14 = vpop.xlane.xlu1 %46 }
 0x12b   :  { %v51_v15 = vmul.f32 0.03125, %v47_v14 }
 0x12d   :  { %v53_v16 = vadd.f32 1e-12, %v51_v15 }
 0x12e   :  { %v50_v17 = vpop.xlane.xlu1 %49 }
 0x12f   :  { %102 = vrsqrt.f32 %v53_v16  ;;  %v52_v18 = vmul.f32 0.03125, %v50_v17 }
 0x131   :  { %v54_v19 = vadd.f32 1e-12, %v52_v18 }
 0x133   :  { %104 = vrsqrt.f32 %v54_v19 }
 0x13c   :  { %v103_v20 = vpop.eup %102 }
 0x13d   :  { %v57_v22 = vmul.f32 %v103_v20, %v41_v6 }
 0x13f   :  { %v66_v24 = vmul.f32 %v96_v21, %v57_v22 }
 0x140   :  { %v105_v25 = vpop.eup %104 }
 0x141   :  { %v58_v26 = vmul.f32 %v105_v25, %v42_v10  ;;  %v75_v27 = vadd.f32 %v97_v23, %v66_v24 }
 0x143   :  { %v67_v28 = vmul.f32 %v96_v21, %v58_v26  ;;  %77 = vst.msk [vmem:[#allocation5] sm:$0xff] %vm31_vm0, %v75_v27 }
 0x145   :  { %v76_v29 = vadd.f32 %v97_v23, %v67_v28 }
 0x147   :  { %78 = vst.msk [vmem:[#allocation5 + $0x8] sm:$0xff] %vm31_vm0, %v76_v29 }
 0x148   :  { %137 = shalt.err (!%p134_p9)
}
 0x149   :  { %90 = dma.vmem_to_hbm [thread:$0]  %s85_s23, 256, %s201_s3, [#allocation4], %s151_s15, %s151_s15, %s152_s16  }
 0x14a   :  { %148 = dma.done.wait [#allocation4], 256  }
 0x14b   :  { %149 = vsyncadd [#allocation4], 4294967040 }
 0x14c   :  { %94 = vsyncpa [#allocation3], 1 }
 0x14d   :  { %95 = vsyncpa [#allocation4], 1 }

</bundles_post_ra>
